<compile_context>
chip_gen: v6e
topology: v6e:2x2x1
jax: 0.10.0
libtpu: 0.0.40
codegen_flags: <defaults>
</compile_context>

<pallas_src>
import jax
import jax.numpy as jnp
from jax.experimental import pallas as pl
from jax.experimental.pallas import tpu as pltpu


def _gcn_pool_lin_kernel(a_ref, x_ref, w_ref, b_ref, mbias_ref, w2_ref, b2_ref,
                         out_ref):
    # GCNConv, reassociated: (A_hat @ X) @ W + b, then ReLU.
    ax = jnp.dot(a_ref[...], x_ref[...],
                 preferred_element_type=jnp.float32)               # (N, F)
    h = jnp.dot(ax, w_ref[...],
                preferred_element_type=jnp.float32) + b_ref[...]   # (N, H)
    h = jnp.maximum(h, 0.0)

    w2 = w2_ref[...]                       # (1, H)
    b2 = b2_ref[0, 0]                      # scalar, read from SMEM
    num_graphs = mbias_ref.shape[1]        # static

    # global max pool per graph via additive bias (0 in-graph, -1e30 outside);
    # one 2-D masked max per graph, no 3-D broadcast. Then lin2 as a VPU
    # multiply + lane reduction (output width is 1, so MXU would be wasted).
    vals = []
    for g in range(num_graphs):                        # static, small G
        bias_g = mbias_ref[:, g:g + 1]                 # (N, 1)
        pooled_g = jnp.max(h + bias_g, axis=0, keepdims=True)        # (1, H)
        vals.append(jnp.sum(pooled_g * w2, axis=-1, keepdims=True) + b2)  # (1,1)

    # lane-dense output slab; real results live at [0, :num_graphs]
    sub = jax.lax.broadcasted_iota(jnp.int32, out_ref.shape, 0)
    lane = jax.lax.broadcasted_iota(jnp.int32, out_ref.shape, 1)
    slab = jnp.zeros(out_ref.shape, jnp.float32)
    for g in range(num_graphs):
        slab = jnp.where((sub == 0) & (lane == g), vals[g], slab)
    out_ref[...] = slab


def gcn_model_forward(x, edge_index, batch, num_graphs, params):
    """x: (N, F) float32, edge_index: (2, E) int32, batch: (N,) int32."""
    N = x.shape[0]
    assert num_graphs <= 128  # TODO(synk): tile the output lane axis for G > 128
    w1, b1, w2, b2 = params["w1"], params["b1"], params["w2"], params["b2"]

    # --- glue: dense symmetrically-normalized adjacency with self loops ---
    # .add (not .set) so duplicate edges are counted, matching PyG GCNConv.
    adj = jnp.zeros((N, N), jnp.float32)
    adj = adj.at[edge_index[1], edge_index[0]].add(1.0)   # message j -> i
    adj = adj + jnp.eye(N, dtype=jnp.float32)             # self loops
    deg = jnp.sum(adj, axis=1)
    dinv = jnp.where(deg > 0, 1.0 / jnp.sqrt(deg), 0.0)
    a_hat = adj * dinv[:, None] * dinv[None, :]

    # --- glue: additive pooling bias, (N, G): 0 if node in graph g else -1e30 ---
    member = batch[:, None] == jnp.arange(num_graphs, dtype=batch.dtype)[None, :]
    mbias = jnp.where(member, 0.0, -1e30).astype(jnp.float32)

    vmem = pl.BlockSpec(memory_space=pltpu.MemorySpace.VMEM)
    smem = pl.BlockSpec(memory_space=pltpu.MemorySpace.SMEM)

    OUT_SUB, OUT_LANE = 8, 128  # full-tile, lane-dense output slab
    slab = pl.pallas_call(
        _gcn_pool_lin_kernel,
        out_shape=jax.ShapeDtypeStruct((OUT_SUB, OUT_LANE), jnp.float32),
        in_specs=[vmem, vmem, vmem, vmem, vmem, vmem, smem],
        out_specs=vmem,
    )(a_hat, x, w1, b1, mbias, w2.reshape(1, -1), b2.reshape(1, 1))
    return slab[0, :num_graphs]                            # (G,)


def _reference(x, edge_index, batch, num_graphs, params):
    N = x.shape[0]
    adj = jnp.zeros((N, N), jnp.float32).at[edge_index[1], edge_index[0]].add(1.0)
    adj = adj + jnp.eye(N)
    deg = jnp.sum(adj, axis=1)
    dinv = jnp.where(deg > 0, 1.0 / jnp.sqrt(deg), 0.0)
    a_hat = adj * dinv[:, None] * dinv[None, :]
    h = jnp.maximum(a_hat @ (x @ params["w1"]) + params["b1"], 0.0)
    pooled = jnp.stack([
        jnp.max(jnp.where((batch == g)[:, None], h, -1e30), axis=0)
        for g in range(num_graphs)
    ])
    return (pooled @ params["w2"] + params["b2"]).reshape(-1)


if __name__ == "__main__":
    # args.num_features=16, args.nhid=32, args.model='gcn', concat=False
    F_IN, H = 16, 32
    N, G = 16, 2                              # 16 nodes, 2 graphs (8 nodes each)

    key = jax.random.PRNGKey(0)
    k_x, k_w1, k_b1, k_w2, k_b2 = jax.random.split(key, 5)

    x = jax.random.normal(k_x, (N, F_IN), jnp.float32)
    batch = jnp.repeat(jnp.arange(G, dtype=jnp.int32), N // G)

    # simple undirected chain edges inside each graph (both directions)
    src, dst = [], []
    for g in range(G):
        base = g * (N // G)
        for i in range(N // G - 1):
            src += [base + i, base + i + 1]
            dst += [base + i + 1, base + i]
    edge_index = jnp.array([src, dst], dtype=jnp.int32)

    params = {
        "w1": jax.random.normal(k_w1, (F_IN, H), jnp.float32) * 0.1,
        "b1": jax.random.normal(k_b1, (1, H), jnp.float32) * 0.1,
        "w2": jax.random.normal(k_w2, (H, 1), jnp.float32) * 0.1,
        "b2": jax.random.normal(k_b2, (1, 1), jnp.float32) * 0.1,
    }

    out = gcn_model_forward(x, edge_index, batch, G, params)
    jax.block_until_ready(out)

    ref = _reference(x, edge_index, batch, G, params)
    assert out.shape == (G,)
    assert jnp.allclose(out, ref, atol=1e-4, rtol=1e-4), (out, ref)

    # TODO(synk): concat=True branch (lin0/lin1 over per-graph 768-d encoder
    # features) not exercised; dropout_ratio is unused in the PyTorch forward.
    print("KERNEL_OK")
</pallas_src>

<mosaic_0001>
module attributes {stable_mosaic.version = 11 : i64} {
  func.func @_gcn_pool_lin_kernel(%arg0: memref<16x16xf32, #tpu.memory_space<vmem>>, %arg1: memref<16x16xf32, #tpu.memory_space<vmem>>, %arg2: memref<16x32xf32, #tpu.memory_space<vmem>>, %arg3: memref<1x32xf32, #tpu.memory_space<vmem>>, %arg4: memref<16x2xf32, #tpu.memory_space<vmem>>, %arg5: memref<1x32xf32, #tpu.memory_space<vmem>>, %arg6: memref<1x1xf32, #tpu.memory_space<smem>>, %arg7: memref<8x128xf32, #tpu.memory_space<vmem>>) attributes {dimension_semantics = [], scalar_prefetch = 0 : i64, scratch_operands = 0 : i64, tpu.core_type = #tpu.core_type<tc>} {
    %c0 = arith.constant 0 : index
    %c0_0 = arith.constant 0 : index
    %0 = vector.load %arg0[%c0, %c0_0] : memref<16x16xf32, #tpu.memory_space<vmem>>, vector<16x16xf32>
    %c0_1 = arith.constant 0 : index
    %c0_2 = arith.constant 0 : index
    %1 = vector.load %arg1[%c0_1, %c0_2] : memref<16x16xf32, #tpu.memory_space<vmem>>, vector<16x16xf32>
    %cst = arith.constant dense<0.000000e+00> : vector<16x16xf32>
    %2 = tpu.matmul %0, %1, %cst {dimension_numbers = #tpu.dot_dimension_numbers<[1], [0], [0], [1], [0, 0, 1, 1], [], []>} : vector<16x16xf32>, vector<16x16xf32>, vector<16x16xf32> -> vector<16x16xf32>
    %c0_3 = arith.constant 0 : index
    %c0_4 = arith.constant 0 : index
    %3 = vector.load %arg2[%c0_3, %c0_4] : memref<16x32xf32, #tpu.memory_space<vmem>>, vector<16x32xf32>
    %cst_5 = arith.constant dense<0.000000e+00> : vector<16x32xf32>
    %4 = tpu.matmul %2, %3, %cst_5 {dimension_numbers = #tpu.dot_dimension_numbers<[1], [0], [0], [1], [0, 0, 1, 1], [], []>} : vector<16x16xf32>, vector<16x32xf32>, vector<16x32xf32> -> vector<16x32xf32>
    %c0_6 = arith.constant 0 : index
    %c0_7 = arith.constant 0 : index
    %5 = vector.load %arg3[%c0_6, %c0_7] : memref<1x32xf32, #tpu.memory_space<vmem>>, vector<1x32xf32>
    %6 = vector.broadcast %5 : vector<1x32xf32> to vector<16x32xf32>
    %7 = arith.addf %4, %6 : vector<16x32xf32>
    %cst_8 = arith.constant 0.000000e+00 : f32
    %8 = vector.broadcast %cst_8 : f32 to vector<16x32xf32>
    %9 = arith.maximumf %7, %8 : vector<16x32xf32>
    %c0_9 = arith.constant 0 : index
    %c0_10 = arith.constant 0 : index
    %10 = vector.load %arg5[%c0_9, %c0_10] : memref<1x32xf32, #tpu.memory_space<vmem>>, vector<1x32xf32>
    %c0_11 = arith.constant 0 : index
    %c0_12 = arith.constant 0 : index
    %11 = memref.load %arg6[%c0_11, %c0_12] : memref<1x1xf32, #tpu.memory_space<smem>>
    %c0_13 = arith.constant 0 : index
    %c0_14 = arith.constant 0 : index
    %12 = vector.load %arg4[%c0_13, %c0_14] : memref<16x2xf32, #tpu.memory_space<vmem>>, vector<16x1xf32>
    %13 = vector.broadcast %12 : vector<16x1xf32> to vector<16x32xf32>
    %14 = arith.addf %9, %13 : vector<16x32xf32>
    %cst_15 = arith.constant dense<0xFF800000> : vector<32xf32>
    %15 = vector.multi_reduction <maximumf>, %14, %cst_15 [0] : vector<16x32xf32> to vector<32xf32>
    %16 = vector.shape_cast %15 : vector<32xf32> to vector<1x32xf32>
    %17 = arith.mulf %16, %10 : vector<1x32xf32>
    %cst_16 = arith.constant dense<0.000000e+00> : vector<1xf32>
    %18 = vector.multi_reduction <add>, %17, %cst_16 [1] : vector<1x32xf32> to vector<1xf32>
    %19 = vector.shape_cast %18 : vector<1xf32> to vector<1x1xf32>
    %20 = vector.broadcast %11 : f32 to vector<1x1xf32>
    %21 = arith.addf %19, %20 : vector<1x1xf32>
    %c0_17 = arith.constant 0 : index
    %c1 = arith.constant 1 : index
    %22 = vector.load %arg4[%c0_17, %c1] : memref<16x2xf32, #tpu.memory_space<vmem>>, vector<16x1xf32>
    %23 = vector.broadcast %22 : vector<16x1xf32> to vector<16x32xf32>
    %24 = arith.addf %9, %23 : vector<16x32xf32>
    %cst_18 = arith.constant dense<0xFF800000> : vector<32xf32>
    %25 = vector.multi_reduction <maximumf>, %24, %cst_18 [0] : vector<16x32xf32> to vector<32xf32>
    %26 = vector.shape_cast %25 : vector<32xf32> to vector<1x32xf32>
    %27 = arith.mulf %26, %10 : vector<1x32xf32>
    %cst_19 = arith.constant dense<0.000000e+00> : vector<1xf32>
    %28 = vector.multi_reduction <add>, %27, %cst_19 [1] : vector<1x32xf32> to vector<1xf32>
    %29 = vector.shape_cast %28 : vector<1xf32> to vector<1x1xf32>
    %30 = vector.broadcast %11 : f32 to vector<1x1xf32>
    %31 = arith.addf %29, %30 : vector<1x1xf32>
    %32 = tpu.iota {dimensions = array<i32: 0>} : vector<8x128xi32>
    %33 = tpu.iota {dimensions = array<i32: 1>} : vector<8x128xi32>
    %cst_20 = arith.constant 0.000000e+00 : f32
    %34 = vector.broadcast %cst_20 : f32 to vector<8x128xf32>
    %c0_i32 = arith.constant 0 : i32
    %35 = vector.broadcast %c0_i32 : i32 to vector<8x128xi32>
    %36 = arith.cmpi eq, %32, %35 : vector<8x128xi32>
    %c0_i32_21 = arith.constant 0 : i32
    %37 = vector.broadcast %c0_i32_21 : i32 to vector<8x128xi32>
    %38 = arith.cmpi eq, %33, %37 : vector<8x128xi32>
    %39 = arith.andi %36, %38 : vector<8x128xi1>
    %40 = vector.shape_cast %21 : vector<1x1xf32> to vector<1x1xf32>
    %41 = vector.broadcast %40 : vector<1x1xf32> to vector<8x128xf32>
    %42 = arith.select %39, %41, %34 : vector<8x128xi1>, vector<8x128xf32>
    %c0_i32_22 = arith.constant 0 : i32
    %43 = vector.broadcast %c0_i32_22 : i32 to vector<8x128xi32>
    %44 = arith.cmpi eq, %32, %43 : vector<8x128xi32>
    %c1_i32 = arith.constant 1 : i32
    %45 = vector.broadcast %c1_i32 : i32 to vector<8x128xi32>
    %46 = arith.cmpi eq, %33, %45 : vector<8x128xi32>
    %47 = arith.andi %44, %46 : vector<8x128xi1>
    %48 = vector.shape_cast %31 : vector<1x1xf32> to vector<1x1xf32>
    %49 = vector.broadcast %48 : vector<1x1xf32> to vector<8x128xf32>
    %50 = arith.select %47, %49, %42 : vector<8x128xi1>, vector<8x128xf32>
    %c0_23 = arith.constant 0 : index
    %c0_24 = arith.constant 0 : index
    %51 = vector.load %arg7[%c0_23, %c0_24] : memref<8x128xf32, #tpu.memory_space<vmem>>, vector<8x128xf32>
    tpu.vector_store %arg7[%c0_23, %c0_24], %50 {strides = array<i32>} : memref<8x128xf32, #tpu.memory_space<vmem>>, vector<8x128xf32>,
    return
  }
}

</mosaic_0001>

<bundles_post_ra>
// kernel: tpu_custom_call.1
= control target key start
LH: loop header
LB: loop body
LE: loop exit
PB: predicated region body
PF: predicated region fallthrough
CT: control target
= control target key end

     0   :  { %13 = vsyncpa [#allocation4], 0  ;;  %s511_s0 = inlined_call_operand.vmem [shape: f32[16,16], index: 0, kind: input, shape index: {}]   ;;  %s512_s1 = inlined_call_operand.hbm [shape: f32[16,16], index: 1, kind: input, shape index: {}]   ;;  %s513_s2 = inlined_call_operand.hbm [shape: f32[16,32], index: 2, kind: input, shape index: {}]   ;;  %s514_s3 = inlined_call_operand.vmem [shape: f32[1,32], index: 3, kind: input, shape index: {}]   ;;  %s515_s4 = inlined_call_operand.vmem [shape: f32[16,2], index: 4, kind: input, shape index: {}]   ;;  %s516_s5 = inlined_call_operand.vmem [shape: f32[1,32], index: 5, kind: input, shape index: {}]   ;;  %s517_s6 = inlined_call_operand.<no memory space> [shape: f32[1,1], index: 6, kind: input, shape index: {}]   ;;  %s518_s7 = inlined_call_operand.hbm [shape: f32[8,128], index: 7, kind: output, shape index: {}]  }
   0x1   :  { %14 = vsyncpa [#allocation7], 0 }
   0x2   :  { %15 = vsyncpa [#allocation5], 0  ;;  %s430_s24 = smov [#allocation3]  }
   0x3   :  { %s23_s25 = sshll.u32 %s430_s24, 4  ;;  %s24_s25 = int_to_ptr.vmem [resolvable:$true] %s23_s25 }
   0x4   :  { %s372_s26 = scalar_lea.vmem %s24_s25, 256  ;;  %p377_p1 = scmp.lt.s32.totalorder %s24_s25, %s24_s25 }
   0x5   :  { %p373_p0 = scmp.ne.s32.totalorder %s24_s25, %s372_s26  ;;  %p378_p2 = scmp.lt.s32.totalorder %s372_s26, %s372_s26 }
   0x7   :  { %p379_p3 = por %p378_p2, %p377_p1 }
   0x9   :  { %p380_p4 = pnand %p379_p3, %p373_p0 }
   0xb   :  { %383 = shalt.err (!%p380_p4)
}
   0xc   :  { %s431_s27 = smov 128   ;;  %s432_s28 = smov 8  }
   0xd   :  { %29 = dma.hbm_to_vmem [thread:$0]  %s512_s1, 256, %s24_s25, [#allocation4], %s431_s27, %s431_s27, %s432_s28  }
   0xe   :  { %s433_s8 = smov [#allocation6]  }
   0xf   :  { %s35_s9 = sshll.u32 %s433_s8, 4  ;;  %s36_s9 = int_to_ptr.vmem [resolvable:$true] %s35_s9 }
  0x10   :  { %s392_s10 = scalar_lea.vmem %s36_s9, 256  ;;  %p397_p6 = scmp.lt.s32.totalorder %s36_s9, %s36_s9 }
  0x11   :  { %p393_p5 = scmp.ne.s32.totalorder %s36_s9, %s392_s10  ;;  %p398_p7 = scmp.lt.s32.totalorder %s392_s10, %s392_s10 }
  0x13   :  { %p399_p8 = por %p398_p7, %p397_p6 }
  0x15   :  { %p400_p9 = pnand %p399_p8, %p393_p5 }
  0x17   :  { %403 = shalt.err (!%p400_p9)
}
  0x18   :  { %41 = dma.hbm_to_vmem [thread:$0]  %s513_s2, 256, %s36_s9, [#allocation7], %s431_s27, %s431_s27, %s432_s28  }
  0x19   :  { %424 = dma.done.wait [#allocation4], 256  }
  0x1a   :  { %425 = vsyncadd [#allocation4], 4294967040 }
  0x1b   :  { %426 = dma.done.wait [#allocation7], 256  }
  0x1c   :  { %427 = vsyncadd [#allocation7], 4294967040  ;;  %vm60_vm0 = vcmask 130048   ;;  %v59_v0 = vld [vmem:[#allocation3 + $0x8] sm:$0xff]  ;;  %v58_v1 = vld [vmem:[#allocation3] sm:$0xff]  ;;  %v434_v7 = vmov 0   ;;  %v291_v50 = vlaneseq  ;;  %v265_v53 = vstv %s517_s6 }
  0x1d   :  { %v56_v2 = vld [vmem:[%s511_s0] sm:$0xff]  ;;  %340 = vmatprep.subr.mxu0 %v59_v0  ;;  %v57_v3 = vld [vmem:[%s511_s0 + $0x8] sm:$0xff]  ;;  %v143_v4 = vld [vmem:[#allocation6 + $0x8] sm:$0xff]  ;;  %361 = vset.pattern.permute.xlu0 %v434_v7  ;;  %v435_v8 = vmov 1   ;;  %vm250_vm1 = vcmask 261120   ;;  %vm261_vm2 = vcmask 253952  }
  0x1e   :  { %344 = vmatprep.mubr.msk.f32.mxu0 %vm60_vm0, %v56_v2  ;;  %341 = vmatpush3.msra.mxu0 %v59_v0  ;;  %v142_v5 = vld [vmem:[#allocation6] sm:$0xff]  ;;  %v236_v6 = vld [vmem:[%s515_s4] sm:$0xff]  ;;  %v237_v9 = vld [vmem:[%s515_s4 + $0x8] sm:$0xff]  ;;  %v292_v51 = vshrl.u32 %v291_v50, 7  ;;  %v294_v52 = vand.u32 127, %v291_v50 }
  0x1f   :  { %342 = vmatprep.subr.mxu0 %v58_v1  ;;  %347 = vmatprep.subr.mxu1 %v143_v4  ;;  %v329_v14 = vld [vmem:[%s514_s3] ss:$0 sm:$0xff] }
  0x20   :  { %343 = vmatpush3.msra.mxu0 %v58_v1  ;;  %348 = vmatpush3.msra.mxu1 %v143_v4  ;;  %v234_v43 = vld [vmem:[%s516_s5] sm:$0x1]  ;;  %v300_v54 = vsub.s32 0, %v292_v51  ;;  %vm295_vm3 = vcmp.eq.s32.totalorder %v292_v51, 0  ;;  %vm296_vm4 = vcmp.eq.s32.totalorder %v294_v52, 0  ;;  %vm303_vm5 = vcmp.eq.s32.totalorder %v294_v52, 1 }
  0x21   :  { %345 = vmatmul.mubr.msk.f32.vlgmr.msra.gmra.mxu0 %vm60_vm0, %v57_v3  ;;  %349 = vmatprep.subr.mxu1 %v142_v5  ;;  %vm297_vm6 = vmand %vm295_vm3, %vm296_vm4  ;;  %s436_s5 = smov [#allocation8]  }
  0x22   :  { %350 = vmatpush3.msra.mxu1 %v142_v5  ;;  %362 = vset.pattern.permute.xlu1 %v435_v8  ;;  %s317_s22 = sshll.u32 %s436_s5, 4  ;;  %vm304_vm7 = vmand %vm295_vm3, %vm303_vm5  ;;  %s318_s22 = int_to_ptr.vmem [resolvable:$true] %s317_s22 }
  0x23   :  { %240 = vperm.xlu0 %361, %v236_v6   ;;  %268 = vperm.xlu1 %362, %v236_v6   ;;  %s404_s23 = scalar_lea.vmem %s318_s22, 128  ;;  %p409_p11 = scmp.lt.s32.totalorder %s318_s22, %s318_s22 }
  0x24   :  { %p405_p10 = scmp.ne.s32.totalorder %s318_s22, %s404_s23  ;;  %p410_p12 = scmp.lt.s32.totalorder %s404_s23, %s404_s23 }
  0x26   :  { %p411_p13 = por %p410_p12, %p409_p11 }
  0x27   :  { %245 = vperm.xlu0 %361, %v237_v9   ;;  %272 = vperm.xlu1 %362, %v237_v9  }
  0x28   :  { %p412_p0 = pnand %p411_p13, %p405_p10 }
  0x2b   :  { %363 = vset.pattern.permute.xlu0 %v435_v8 }
  0x9e   :  { %v269_v12 = vpop.permute.xlu1 %268  ;;  %v241_v13 = vpop.permute.xlu0 %240 }
  0xa2   :  { %v273_v18 = vpop.permute.xlu1 %272  ;;  %v246_v21 = vpop.permute.xlu0 %245 }
  0xe1   :  { %v346_v10 = vpop.f32.mrf.mxu0 }
  0xe3   :  { %v133_v11 = vpop.f32.mrf.mxu0 }
  0xe4   :  { %351 = vmatprep.mubr.msk.f32.mxu1 %vm60_vm0, %v133_v11 }
  0xe5   :  { %352 = vmatmul.mubr.msk.f32.vlgmr.msra.gmra.mxu1 %vm60_vm0, %v346_v10 }
 0x1a5   :  { %v353_v15 = vpop.f32.mrf.mxu1 }
 0x1a6   :  { %v229_v16 = vadd.f32 %v353_v15, %v329_v14 }
 0x1a7   :  { %v223_v17 = vpop.f32.mrf.mxu1 }
 0x1a8   :  { %v233_v19 = vmax.f32 %v229_v16, 0.0  ;;  %v224_v20 = vadd.f32 %v329_v14, %v223_v17 }
 0x1aa   :  { %v249_v22 = vadd.f32 %v246_v21, %v233_v19  ;;  %v232_v23 = vmax.f32 %v224_v20, 0.0  ;;  %v276_v24 = vadd.f32 %v273_v18, %v233_v19 }
 0x1ac   :  { %v248_v25 = vadd.f32 %v241_v13, %v232_v23  ;;  %v275_v26 = vadd.f32 %v269_v12, %v232_v23  ;;  %v252_v27 = vsel %vm250_vm1, %v249_v22, -inf  ;;  %v278_v30 = vsel %vm250_vm1, %v276_v24, -inf }
 0x1ae   :  { %v251_v28 = vsel %vm250_vm1, %v248_v25, -inf  ;;  %v277_v29 = vsel %vm250_vm1, %v275_v26, -inf }
 0x1af   :  { %v253_v31 = vmax.f32 %v251_v28, %v252_v27  ;;  %v279_v32 = vmax.f32 %v277_v29, %v278_v30 }
 0x1b1   :  { %v254_v33 = vrot.slane %v253_v31, 4  ;;  %v280_v34 = vrot.slane %v279_v32, 4 }
 0x1b3   :  { %v255_v35 = vmax.f32 %v253_v31, %v254_v33  ;;  %v281_v36 = vmax.f32 %v279_v32, %v280_v34 }
 0x1b5   :  { %v282_v37 = vrot.slane %v281_v36, 2  ;;  %v256_v38 = vrot.slane %v255_v35, 2 }
 0x1b7   :  { %v283_v39 = vmax.f32 %v281_v36, %v282_v37  ;;  %v257_v40 = vmax.f32 %v255_v35, %v256_v38 }
 0x1b9   :  { %v284_v41 = vrot.slane %v283_v39, 1  ;;  %v258_v42 = vrot.slane %v257_v40, 1 }
 0x1bb   :  { %v285_v44 = vmax.f32 %v283_v39, %v284_v41  ;;  %v259_v45 = vmax.f32 %v257_v40, %v258_v42 }
 0x1bd   :  { %v286_v46 = vmul.f32 %v285_v44, %v234_v43  ;;  %v260_v47 = vmul.f32 %v259_v45, %v234_v43 }
 0x1bf   :  { %v287_v48 = vsel %vm261_vm2, %v286_v46, 0.0  ;;  %v262_v49 = vsel %vm261_vm2, %v260_v47, 0.0 }
 0x1c0   :  { %288 = vadd.xlane.f32.xlu1 %v287_v48  ;;  %263 = vadd.xlane.f32.xlu0 %v262_v49 }
 0x249   :  { %v289_v55 = vpop.xlane.xlu1 %288  ;;  %v264_v56 = vpop.xlane.xlu0 %263 }
 0x24a   :  { %v290_v57 = vadd.f32 %v289_v55, %v265_v53  ;;  %v266_v58 = vadd.f32 %v265_v53, %v264_v56 }
 0x24c   :  { %v308_v59 = vrot.slane %v290_v57, %v300_v54  ;;  %v301_v60 = vrot.slane %v266_v58, %v300_v54 }
 0x24e   :  { %v302_v61 = vsel %vm297_vm6, %v301_v60, 0.0 }
 0x24f   :  { %v309_v62 = vsel %vm304_vm7, %v308_v59, %v302_v61 }
 0x250   :  { %310 = vst [vmem:[#allocation8] sm:$0xff] %v309_v62 }
 0x251   :  { %415 = shalt.err (!%p412_p0)
}
 0x252   :  { %320 = dma.vmem_to_hbm [thread:$0]  %s318_s22, 128, %s518_s7, [#allocation5]  }
 0x253   :  { %428 = dma.done.wait [#allocation5], 128  }
 0x254   :  { %429 = vsyncadd [#allocation5], 4294967168 }
 0x255   :  { %324 = vsyncpa [#allocation4], 1 }
 0x256   :  { %325 = vsyncpa [#allocation7], 1 }
 0x257   :  { %326 = vsyncpa [#allocation5], 1 }

</bundles_post_ra>
